<compile_context>
chip_gen: v6e
topology: v6e:2x2x1
jax: 0.10.0
libtpu: 0.0.40
codegen_flags: <defaults>
</compile_context>

<pallas_src>
import jax
import jax.numpy as jnp
from jax.experimental import pallas as pl
from jax.experimental.pallas import tpu as pltpu


# ----------------------------------------------------------------------------
# Fused kernel: tiled LM head (hidden @ wte^T + b) + online-logsumexp CE.
#
# grid = (M//tm, V//tn, H//tk), iterated with k innermost, then j, then i.
#   i: row blocks of hidden (B*S rows)        -> "parallel" (megacore)
#   j: vocab tiles (online LSE reduction)     -> "arbitrary"
#   k: hidden-dim tiles (matmul reduction)    -> "arbitrary" (usually size 1)
# ----------------------------------------------------------------------------
def fused_lm_head_ce_kernel(h_ref, w_ref, b_ref, lbl_ref,      # inputs
                            logits_ref, nll_ref,               # outputs
                            m_ref, s_ref, p_ref):              # scratch
    j = pl.program_id(1)
    k = pl.program_id(2)
    nj = pl.num_programs(1)
    nk = pl.num_programs(2)

    # Reset the online-softmax accumulators at the start of each row block.
    @pl.when((j == 0) & (k == 0))
    def _init_lse():
        m_ref[...] = jnp.full_like(m_ref, -jnp.inf)
        s_ref[...] = jnp.zeros_like(s_ref)
        p_ref[...] = jnp.zeros_like(p_ref)

    # The logits output block (index (i, j), constant across k) is VMEM
    # resident for the whole k sweep: initialize it with the bias and
    # accumulate the MXU result straight into it (no scratch accumulator).
    @pl.when(k == 0)
    def _init_logits():
        logits_ref[...] = jnp.broadcast_to(b_ref[...], logits_ref.shape)

    # hidden [tm, tk] (bf16) x wte [tn, tk] (bf16), contracted on H -> f32.
    logits_ref[...] += jax.lax.dot_general(
        h_ref[...], w_ref[...],
        dimension_numbers=(((1,), (1,)), ((), ())),
        preferred_element_type=jnp.float32)

    # Logits tile is complete: fold it into the online logsumexp.
    @pl.when(k == nk - 1)
    def _update():
        tile = logits_ref[...]                               # [tm, tn] f32
        labels = lbl_ref[...]                                # [tm, 1] i32
        tn = tile.shape[1]

        # (1, tn) iota broadcast against (tm, 1) labels -> (tm, tn) mask.
        vocab_idx = jax.lax.broadcasted_iota(jnp.int32, (1, tn), 1) + j * tn
        picked = jnp.sum(jnp.where(vocab_idx == labels, tile, 0.0),
                         axis=-1, keepdims=True)             # [tm, 1]

        tile_max = jnp.max(tile, axis=-1, keepdims=True)     # [tm, 1]
        m_prev = m_ref[...]
        m_new = jnp.maximum(m_prev, tile_max)
        s_ref[...] = (s_ref[...] * jnp.exp(m_prev - m_new)
                      + jnp.sum(jnp.exp(tile - m_new), axis=-1, keepdims=True))
        p_ref[...] += picked
        m_ref[...] = m_new

        # Last vocab tile for this row block: write per-token NLL.
        @pl.when(j == nj - 1)
        def _flush():
            lse = m_ref[...] + jnp.log(s_ref[...])           # [tm, 1]
            valid = (labels != -100).astype(jnp.float32)     # ignore_index
            nll_ref[...] = (lse - p_ref[...]) * valid


# ----------------------------------------------------------------------------
# Tile selection helpers.
# ----------------------------------------------------------------------------
def _default_tiles():
    """Per-generation row-block preference and VMEM budget.

    Ridge-point heuristics: v5e ~256, v7x ~384-512 (64 MiB VMEM), v6e ~1024.
    Falls back to (512 rows, 48 MiB) if hardware introspection is unavailable.
    """
    tm_pref, budget = 512, 48 * 1024 * 1024
    try:
        info = pltpu.get_tpu_info()
        cap = int(getattr(info, "vmem_capacity_bytes", 64 * 1024 * 1024))
        budget = min(int(cap * 3 // 4), 96 * 1024 * 1024)
        ver = str(getattr(info, "chip_version", ""))
        if "5" in ver:
            tm_pref = 256
        elif "7" in ver:
            tm_pref = 512
        elif "6" in ver:
            tm_pref = 1024
    except Exception:
        pass
    return tm_pref, budget


def _pick_tile(dim, preferred, align):
    """Largest multiple of `align` that divides `dim` and is <= preferred;
    falls back to `dim` itself (full-extent blocks are always legal)."""
    t = (min(preferred, dim) // align) * align
    while t >= align:
        if dim % t == 0:
            return t
        t -= align
    return dim


def _auto_tk(H, tm, tn, budget):
    """Prefer tk == H (hidden resident per row block, single MXU call per
    (i, j)); otherwise the largest 128-multiple divisor of H that fits."""
    def fits(tk):
        ins = 2 * 2 * (tm + tn) * tk          # bf16 hidden + wte, double-buffered
        outs = 2 * (tm * tn + tm) * 4         # f32 logits + nll blocks
        scr = 3 * tm * 4                      # m / s / p scratch
        return ins + outs + scr <= budget

    if fits(H):
        return H
    best = None
    tk = 128
    while tk <= H:
        if H % tk == 0 and fits(tk):
            best = tk
        tk += 128
    return best if best is not None else H


# ----------------------------------------------------------------------------
# Wrapper around pallas_call.
# ----------------------------------------------------------------------------
def fused_lm_head_ce(hidden, wte, bias, shift_labels, *, tm=None, tn=None, tk=None):
    """hidden [M,H] bf16, wte [V,H] bf16, bias [1,V] f32, shift_labels [M,1] i32.

    Returns (logits [M,V] f32, per-token NLL [M,1] f32).
    """
    M, H = hidden.shape
    V, H_w = wte.shape
    assert H == H_w

    tm_pref, vmem_budget = _default_tiles()
    if tm is None:
        tm = _pick_tile(M, tm_pref, 8)
    if tn is None:
        tn = _pick_tile(V, 512, 128)
    tm = min(tm, M)
    tn = min(tn, V)
    if tk is None:
        tk = _auto_tk(H, tm, tn, vmem_budget)
    tk = min(tk, H)
    assert M % tm == 0 and V % tn == 0 and H % tk == 0, (M, V, H, tm, tn, tk)

    grid = (M // tm, V // tn, H // tk)

    cost = pl.CostEstimate(
        flops=2 * M * H * V,
        transcendentals=M * V,
        bytes_accessed=(M * H * hidden.dtype.itemsize
                        + V * H * wte.dtype.itemsize
                        + V * 4 + M * 4          # bias + labels
                        + M * V * 4 + M * 4),    # logits + nll
    )

    # NOTE: wte is kept in [V, H] layout and contracted on dim 1 of both
    # operands; a pre-transposed [H, V] layout is an alternative if bundle
    # dumps ever show vxpose traffic competing with vmatmul pushes.
    logits, nll = pl.pallas_call(
        fused_lm_head_ce_kernel,
        out_shape=(jax.ShapeDtypeStruct((M, V), jnp.float32),
                   jax.ShapeDtypeStruct((M, 1), jnp.float32)),
        grid_spec=pltpu.PrefetchScalarGridSpec(
            num_scalar_prefetch=0,
            grid=grid,
            in_specs=[
                pl.BlockSpec((tm, tk), lambda i, j, k: (i, k)),   # hidden
                pl.BlockSpec((tn, tk), lambda i, j, k: (j, k)),   # wte [V,H]
                pl.BlockSpec((1, tn), lambda i, j, k: (0, j)),    # bias
                pl.BlockSpec((tm, 1), lambda i, j, k: (i, 0)),    # labels
            ],
            out_specs=[
                pl.BlockSpec((tm, tn), lambda i, j, k: (i, j)),   # logits
                pl.BlockSpec((tm, 1), lambda i, j, k: (i, 0)),    # per-token NLL
            ],
            scratch_shapes=[
                pltpu.VMEM((tm, 1), jnp.float32),    # running max
                pltpu.VMEM((tm, 1), jnp.float32),    # running sum-exp
                pltpu.VMEM((tm, 1), jnp.float32),    # picked logit
            ]),
        compiler_params=pltpu.CompilerParams(
            dimension_semantics=("parallel", "arbitrary", "arbitrary"),
            vmem_limit_bytes=vmem_budget),
        cost_estimate=cost,
    )(hidden, wte, bias, shift_labels)
    return logits, nll


# ----------------------------------------------------------------------------
# Synthetic BaseCLMModel forward: embed -> fused LM head + shifted CE loss
# ----------------------------------------------------------------------------
def base_clm_forward(params, input_ids, labels, *, tm=None, tn=None, tk=None):
    B, S = input_ids.shape
    wte, wpe, lm_b = params["wte"], params["wpe"], params["lm_b"]
    V, H = wte.shape

    # glue: embedding lookups (gather) in plain JAX; bf16 operands into MXU.
    hidden = (wte[input_ids].astype(jnp.float32)
              + wpe[jnp.arange(S)][None, :, :].astype(jnp.float32))
    hidden = hidden.reshape(B * S, H).astype(jnp.bfloat16)

    # Shift done by masking (no S-1 sublane slices): position t predicts
    # labels[t+1]; the last position of each row gets ignore_index=-100.
    shift_labels = jnp.concatenate(
        [labels[:, 1:], jnp.full((B, 1), -100, labels.dtype)], axis=1)
    shift_labels = shift_labels.reshape(B * S, 1).astype(jnp.int32)

    logits_flat, nll = fused_lm_head_ce(hidden, wte, lm_b, shift_labels,
                                        tm=tm, tn=tn, tk=tk)
    logits = logits_flat.reshape(B, S, V)

    # sum over seq, mean over batch == total sum / B  (matches compute_loss)
    loss = jnp.sum(nll) / jnp.float32(B)
    return loss, logits


# pure-JAX reference of compute_loss for verification
def ref_loss(logits, labels):
    shift_logits = logits[:, :-1, :]
    shift_labels = labels[:, 1:]
    logp = jax.nn.log_softmax(shift_logits.astype(jnp.float32), axis=-1)
    picked = jnp.take_along_axis(
        logp, jnp.maximum(shift_labels, 0)[..., None], axis=-1)[..., 0]
    per_tok = -picked * (shift_labels != -100)
    return jnp.mean(jnp.sum(per_tok, axis=-1))


if __name__ == "__main__":
    B, S, H, V = 2, 16, 256, 512          # small, but exercises all grid axes

    key = jax.random.PRNGKey(0)
    k1, k2, k3 = jax.random.split(key, 3)

    params = {
        "wte": (0.02 * jax.random.normal(k1, (V, H))).astype(jnp.bfloat16),
        "wpe": (0.02 * jax.random.normal(k2, (S, H))).astype(jnp.bfloat16),
        "lm_b": jnp.zeros((1, V), jnp.float32),
    }

    input_ids = jax.random.randint(k3, (B, S), 0, V, dtype=jnp.int32)
    labels = input_ids  # standard CLM setup: labels = input_ids (shift inside)

    # reference logits (same bf16 inputs, f32 accumulation)
    hidden = (params["wte"][input_ids].astype(jnp.float32)
              + params["wpe"][jnp.arange(S)][None, :, :].astype(jnp.float32))
    hidden = hidden.reshape(B * S, H).astype(jnp.bfloat16)
    ref_logits = (jnp.dot(hidden.astype(jnp.float32),
                          params["wte"].astype(jnp.float32).T,
                          precision=jax.lax.Precision.HIGHEST)
                  + params["lm_b"]).reshape(B, S, V)

    configs = [
        dict(tm=None, tn=None, tk=None),   # auto: tk=H, single k step
        dict(tm=16, tn=256, tk=256),       # tk=H with multiple row/vocab blocks
        dict(tm=16, tn=256, tk=128),       # exercises the k reduction axis
    ]
    for cfg in configs:
        fwd = jax.jit(lambda p, x, y, cfg=cfg: base_clm_forward(p, x, y, **cfg))
        loss, logits = fwd(params, input_ids, labels)
        jax.block_until_ready((loss, logits))

        assert logits.shape == (B, S, V)
        assert jnp.allclose(logits, ref_logits, rtol=1e-3, atol=1e-3), (
            cfg, float(jnp.max(jnp.abs(logits - ref_logits))))
        ref = ref_loss(logits, labels)
        assert jnp.allclose(loss, ref, rtol=1e-4, atol=1e-4), (
            cfg, float(loss), float(ref))

    print("KERNEL_OK")
</pallas_src>

<mosaic_0001>
module attributes {stable_mosaic.version = 11 : i64} {
  func.func @fused_lm_head_ce_kernel(%arg0: i32, %arg1: i32, %arg2: i32, %arg3: memref<32x256xbf16, #tpu.memory_space<vmem>>, %arg4: memref<512x256xbf16, #tpu.memory_space<vmem>>, %arg5: memref<1x512xf32, #tpu.memory_space<vmem>>, %arg6: memref<32x1xi32, #tpu.memory_space<vmem>>, %arg7: memref<32x512xf32, #tpu.memory_space<vmem>>, %arg8: memref<32x1xf32, #tpu.memory_space<vmem>>, %arg9: memref<32x1xf32, #tpu.memory_space<vmem>>, %arg10: memref<32x1xf32, #tpu.memory_space<vmem>>, %arg11: memref<32x1xf32, #tpu.memory_space<vmem>>) attributes {dimension_semantics = [#tpu.dimension_semantics<parallel>, #tpu.dimension_semantics<arbitrary>, #tpu.dimension_semantics<arbitrary>], iteration_bounds = array<i64: 1, 1, 1>, scalar_prefetch = 0 : i64, scratch_operands = 3 : i64, tpu.core_type = #tpu.core_type<tc>, window_params = [{transform_indices = @transform_0, window_bounds = array<i64: 32, 256>}, {transform_indices = @transform_1, window_bounds = array<i64: 512, 256>}, {transform_indices = @transform_2, window_bounds = array<i64: 1, 512>}, {transform_indices = @transform_3, window_bounds = array<i64: 32, 1>}, {transform_indices = @transform_4, window_bounds = array<i64: 32, 512>}, {transform_indices = @transform_5, window_bounds = array<i64: 32, 1>}]} {
    %c0_i32 = arith.constant 0 : i32
    %0 = arith.cmpi eq, %arg1, %c0_i32 : i32
    %c0_i32_0 = arith.constant 0 : i32
    %1 = arith.cmpi eq, %arg2, %c0_i32_0 : i32
    %2 = arith.andi %0, %1 : i1
    %3 = arith.extui %2 : i1 to i32
    %c0_i32_1 = arith.constant 0 : i32
    %4 = arith.cmpi ne, %3, %c0_i32_1 : i32
    scf.if %4 {
      %cst_13 = arith.constant 0xFF800000 : f32
      %17 = vector.broadcast %cst_13 : f32 to vector<32x1xf32>
      %c0_14 = arith.constant 0 : index
      %c0_15 = arith.constant 0 : index
      %18 = vector.load %arg9[%c0_14, %c0_15] : memref<32x1xf32, #tpu.memory_space<vmem>>, vector<32x1xf32>
      tpu.vector_store %arg9[%c0_14, %c0_15], %17 {strides = array<i32>} : memref<32x1xf32, #tpu.memory_space<vmem>>, vector<32x1xf32>,
      %cst_16 = arith.constant 0.000000e+00 : f32
      %19 = vector.broadcast %cst_16 : f32 to vector<32x1xf32>
      %c0_17 = arith.constant 0 : index
      %c0_18 = arith.constant 0 : index
      %20 = vector.load %arg10[%c0_17, %c0_18] : memref<32x1xf32, #tpu.memory_space<vmem>>, vector<32x1xf32>
      tpu.vector_store %arg10[%c0_17, %c0_18], %19 {strides = array<i32>} : memref<32x1xf32, #tpu.memory_space<vmem>>, vector<32x1xf32>,
      %cst_19 = arith.constant 0.000000e+00 : f32
      %21 = vector.broadcast %cst_19 : f32 to vector<32x1xf32>
      %c0_20 = arith.constant 0 : index
      %c0_21 = arith.constant 0 : index
      %22 = vector.load %arg11[%c0_20, %c0_21] : memref<32x1xf32, #tpu.memory_space<vmem>>, vector<32x1xf32>
      tpu.vector_store %arg11[%c0_20, %c0_21], %21 {strides = array<i32>} : memref<32x1xf32, #tpu.memory_space<vmem>>, vector<32x1xf32>,
    } else {
    }
    %c0_i32_2 = arith.constant 0 : i32
    %5 = arith.cmpi eq, %arg2, %c0_i32_2 : i32
    %6 = arith.extui %5 : i1 to i32
    %c0_i32_3 = arith.constant 0 : i32
    %7 = arith.cmpi ne, %6, %c0_i32_3 : i32
    scf.if %7 {
      %c0_13 = arith.constant 0 : index
      %c0_14 = arith.constant 0 : index
      %17 = vector.load %arg5[%c0_13, %c0_14] : memref<1x512xf32, #tpu.memory_space<vmem>>, vector<1x512xf32>
      %18 = vector.shape_cast %17 : vector<1x512xf32> to vector<1x512xf32>
      %19 = vector.broadcast %18 : vector<1x512xf32> to vector<32x512xf32>
      %c0_15 = arith.constant 0 : index
      %c0_16 = arith.constant 0 : index
      %20 = vector.load %arg7[%c0_15, %c0_16] : memref<32x512xf32, #tpu.memory_space<vmem>>, vector<32x512xf32>
      tpu.vector_store %arg7[%c0_15, %c0_16], %19 {strides = array<i32>} : memref<32x512xf32, #tpu.memory_space<vmem>>, vector<32x512xf32>,
    } else {
    }
    %c0 = arith.constant 0 : index
    %c0_4 = arith.constant 0 : index
    %8 = vector.load %arg7[%c0, %c0_4] : memref<32x512xf32, #tpu.memory_space<vmem>>, vector<32x512xf32>
    %c0_5 = arith.constant 0 : index
    %c0_6 = arith.constant 0 : index
    %9 = vector.load %arg3[%c0_5, %c0_6] : memref<32x256xbf16, #tpu.memory_space<vmem>>, vector<32x256xbf16>
    %c0_7 = arith.constant 0 : index
    %c0_8 = arith.constant 0 : index
    %10 = vector.load %arg4[%c0_7, %c0_8] : memref<512x256xbf16, #tpu.memory_space<vmem>>, vector<512x256xbf16>
    %cst = arith.constant dense<0.000000e+00> : vector<32x512xf32>
    %11 = tpu.matmul %9, %10, %cst {dimension_numbers = #tpu.dot_dimension_numbers<[1], [1], [0], [0], [0, 0, 1, 0], [], []>} : vector<32x256xbf16>, vector<512x256xbf16>, vector<32x512xf32> -> vector<32x512xf32>
    %12 = arith.addf %8, %11 : vector<32x512xf32>
    %c0_9 = arith.constant 0 : index
    %c0_10 = arith.constant 0 : index
    %13 = vector.load %arg7[%c0_9, %c0_10] : memref<32x512xf32, #tpu.memory_space<vmem>>, vector<32x512xf32>
    tpu.vector_store %arg7[%c0_9, %c0_10], %12 {strides = array<i32>} : memref<32x512xf32, #tpu.memory_space<vmem>>, vector<32x512xf32>,
    %c0_i32_11 = arith.constant 0 : i32
    %14 = arith.cmpi eq, %arg2, %c0_i32_11 : i32
    %15 = arith.extui %14 : i1 to i32
    %c0_i32_12 = arith.constant 0 : i32
    %16 = arith.cmpi ne, %15, %c0_i32_12 : i32
    scf.if %16 {
      %c0_13 = arith.constant 0 : index
      %c0_14 = arith.constant 0 : index
      %17 = vector.load %arg7[%c0_13, %c0_14] : memref<32x512xf32, #tpu.memory_space<vmem>>, vector<32x512xf32>
      %c0_15 = arith.constant 0 : index
      %c0_16 = arith.constant 0 : index
      %18 = vector.load %arg6[%c0_15, %c0_16] : memref<32x1xi32, #tpu.memory_space<vmem>>, vector<32x1xi32>
      %19 = tpu.iota {dimensions = array<i32: 1>} : vector<1x512xi32>
      %c512_i32 = arith.constant 512 : i32
      %20 = arith.muli %arg1, %c512_i32 : i32
      %21 = vector.broadcast %20 : i32 to vector<1x512xi32>
      %22 = arith.addi %19, %21 : vector<1x512xi32>
      %23 = vector.broadcast %22 : vector<1x512xi32> to vector<32x512xi32>
      %24 = vector.broadcast %18 : vector<32x1xi32> to vector<32x512xi32>
      %25 = arith.cmpi eq, %23, %24 : vector<32x512xi32>
      %cst_17 = arith.constant 0.000000e+00 : f32
      %26 = vector.broadcast %cst_17 : f32 to vector<32x512xf32>
      %27 = arith.select %25, %17, %26 : vector<32x512xi1>, vector<32x512xf32>
      %cst_18 = arith.constant dense<0.000000e+00> : vector<32xf32>
      %28 = vector.multi_reduction <add>, %27, %cst_18 [1] : vector<32x512xf32> to vector<32xf32>
      %29 = vector.shape_cast %28 : vector<32xf32> to vector<32x1xf32>
      %cst_19 = arith.constant dense<0xFF800000> : vector<32xf32>
      %30 = vector.multi_reduction <maximumf>, %17, %cst_19 [1] : vector<32x512xf32> to vector<32xf32>
      %31 = vector.shape_cast %30 : vector<32xf32> to vector<32x1xf32>
      %c0_20 = arith.constant 0 : index
      %c0_21 = arith.constant 0 : index
      %32 = vector.load %arg9[%c0_20, %c0_21] : memref<32x1xf32, #tpu.memory_space<vmem>>, vector<32x1xf32>
      %33 = arith.maximumf %32, %31 : vector<32x1xf32>
      %c0_22 = arith.constant 0 : index
      %c0_23 = arith.constant 0 : index
      %34 = vector.load %arg10[%c0_22, %c0_23] : memref<32x1xf32, #tpu.memory_space<vmem>>, vector<32x1xf32>
      %35 = arith.subf %32, %33 : vector<32x1xf32>
      %36 = math.exp %35 : vector<32x1xf32>
      %37 = arith.mulf %34, %36 : vector<32x1xf32>
      %38 = vector.broadcast %33 : vector<32x1xf32> to vector<32x512xf32>
      %39 = arith.subf %17, %38 : vector<32x512xf32>
      %40 = math.exp %39 : vector<32x512xf32>
      %cst_24 = arith.constant dense<0.000000e+00> : vector<32xf32>
      %41 = vector.multi_reduction <add>, %40, %cst_24 [1] : vector<32x512xf32> to vector<32xf32>
      %42 = vector.shape_cast %41 : vector<32xf32> to vector<32x1xf32>
      %43 = arith.addf %37, %42 : vector<32x1xf32>
      %c0_25 = arith.constant 0 : index
      %c0_26 = arith.constant 0 : index
      %44 = vector.load %arg10[%c0_25, %c0_26] : memref<32x1xf32, #tpu.memory_space<vmem>>, vector<32x1xf32>
      tpu.vector_store %arg10[%c0_25, %c0_26], %43 {strides = array<i32>} : memref<32x1xf32, #tpu.memory_space<vmem>>, vector<32x1xf32>,
      %c0_27 = arith.constant 0 : index
      %c0_28 = arith.constant 0 : index
      %45 = vector.load %arg11[%c0_27, %c0_28] : memref<32x1xf32, #tpu.memory_space<vmem>>, vector<32x1xf32>
      %46 = arith.addf %45, %29 : vector<32x1xf32>
      %c0_29 = arith.constant 0 : index
      %c0_30 = arith.constant 0 : index
      %47 = vector.load %arg11[%c0_29, %c0_30] : memref<32x1xf32, #tpu.memory_space<vmem>>, vector<32x1xf32>
      tpu.vector_store %arg11[%c0_29, %c0_30], %46 {strides = array<i32>} : memref<32x1xf32, #tpu.memory_space<vmem>>, vector<32x1xf32>,
      %c0_31 = arith.constant 0 : index
      %c0_32 = arith.constant 0 : index
      %48 = vector.load %arg9[%c0_31, %c0_32] : memref<32x1xf32, #tpu.memory_space<vmem>>, vector<32x1xf32>
      tpu.vector_store %arg9[%c0_31, %c0_32], %33 {strides = array<i32>} : memref<32x1xf32, #tpu.memory_space<vmem>>, vector<32x1xf32>,
      %c0_i32_33 = arith.constant 0 : i32
      %49 = arith.cmpi eq, %arg1, %c0_i32_33 : i32
      %50 = arith.extui %49 : i1 to i32
      %c0_i32_34 = arith.constant 0 : i32
      %51 = arith.cmpi ne, %50, %c0_i32_34 : i32
      scf.if %51 {
        %c0_35 = arith.constant 0 : index
        %c0_36 = arith.constant 0 : index
        %52 = vector.load %arg9[%c0_35, %c0_36] : memref<32x1xf32, #tpu.memory_space<vmem>>, vector<32x1xf32>
        %c0_37 = arith.constant 0 : index
        %c0_38 = arith.constant 0 : index
        %53 = vector.load %arg10[%c0_37, %c0_38] : memref<32x1xf32, #tpu.memory_space<vmem>>, vector<32x1xf32>
        %54 = math.log %53 : vector<32x1xf32>
        %55 = arith.addf %52, %54 : vector<32x1xf32>
        %c-100_i32 = arith.constant -100 : i32
        %56 = vector.broadcast %c-100_i32 : i32 to vector<32x1xi32>
        %57 = arith.cmpi ne, %18, %56 : vector<32x1xi32>
        %58 = arith.extui %57 : vector<32x1xi1> to vector<32x1xi32>
        %59 = arith.sitofp %58 : vector<32x1xi32> to vector<32x1xf32>
        %c0_39 = arith.constant 0 : index
        %c0_40 = arith.constant 0 : index
        %60 = vector.load %arg11[%c0_39, %c0_40] : memref<32x1xf32, #tpu.memory_space<vmem>>, vector<32x1xf32>
        %61 = arith.subf %55, %60 : vector<32x1xf32>
        %62 = arith.mulf %61, %59 : vector<32x1xf32>
        %c0_41 = arith.constant 0 : index
        %c0_42 = arith.constant 0 : index
        %63 = vector.load %arg8[%c0_41, %c0_42] : memref<32x1xf32, #tpu.memory_space<vmem>>, vector<32x1xf32>
        tpu.vector_store %arg8[%c0_41, %c0_42], %62 {strides = array<i32>} : memref<32x1xf32, #tpu.memory_space<vmem>>, vector<32x1xf32>,
      } else {
      }
    } else {
    }
    return
  }
  func.func @transform_0(%arg0: i32, %arg1: i32, %arg2: i32) -> (i32, i32) {
    %c0_i32 = arith.constant 0 : i32
    return %arg0, %arg2 : i32, i32
  }
  func.func @transform_1(%arg0: i32, %arg1: i32, %arg2: i32) -> (i32, i32) {
    %c0_i32 = arith.constant 0 : i32
    return %arg1, %arg2 : i32, i32
  }
  func.func @transform_2(%arg0: i32, %arg1: i32, %arg2: i32) -> (i32, i32) {
    %c0_i32 = arith.constant 0 : i32
    %c0_i32_0 = arith.constant 0 : i32
    return %c0_i32, %arg1 : i32, i32
  }
  func.func @transform_3(%arg0: i32, %arg1: i32, %arg2: i32) -> (i32, i32) {
    %c0_i32 = arith.constant 0 : i32
    %c0_i32_0 = arith.constant 0 : i32
    return %arg0, %c0_i32 : i32, i32
  }
  func.func @transform_4(%arg0: i32, %arg1: i32, %arg2: i32) -> (i32, i32) {
    %c0_i32 = arith.constant 0 : i32
    return %arg0, %arg1 : i32, i32
  }
  func.func @transform_5(%arg0: i32, %arg1: i32, %arg2: i32) -> (i32, i32) {
    %c0_i32 = arith.constant 0 : i32
    %c0_i32_0 = arith.constant 0 : i32
    return %arg0, %c0_i32 : i32, i32
  }
}

</mosaic_0001>

<bundles_post_ra>
// kernel: _lambda_.1
= control target key start
LH: loop header
LB: loop body
LE: loop exit
PB: predicated region body
PF: predicated region fallthrough
CT: control target
= control target key end

     0   :  { %s1726_s0 = inlined_call_operand.vmem [shape: bf16[32,256], index: 0, kind: input, shape index: {}]   ;;  %s1727_s1 = inlined_call_operand.vmem [shape: bf16[512,256], index: 1, kind: input, shape index: {}]   ;;  %s1728_s2 = inlined_call_operand.vmem [shape: f32[1,512], index: 2, kind: input, shape index: {}]   ;;  %s1729_s3 = inlined_call_operand.vmem [shape: s32[32,1], index: 3, kind: input, shape index: {}]   ;;  %s1730_s4 = inlined_call_operand.hbm [shape: f32[32,512], index: 4, kind: output, shape index: {0}]   ;;  %s1731_s5 = inlined_call_operand.vmem [shape: f32[32,1], index: 5, kind: output, shape index: {1}]  }
   0x1   :  { %v1052_v0 = vld [vmem:[%s1727_s1 + $0x74] ss:$8 sps:$4 sm:$0xff]   ;;  %v1056_v2 = vld [vmem:[%s1727_s1 + $0x70] ss:$8 sps:$4 sm:$0xff]   ;;  %v1058_v4 = vld [vmem:[%s1727_s1 + $0x64] ss:$8 sps:$4 sm:$0xff]  }
   0x2   :  { %v1054_v1 = vld [vmem:[%s1727_s1 + $0x174] ss:$8 sps:$4 sm:$0xff]   ;;  %504 = vmatprep.subr.bf16.mxu0 %v1052_v0  ;;  %v1057_v3 = vld [vmem:[%s1727_s1 + $0x170] ss:$8 sps:$4 sm:$0xff]   ;;  %v1060_v5 = vld [vmem:[%s1727_s1 + $0x164] ss:$8 sps:$4 sm:$0xff]  }
   0x3   :  { %557 = vmatprep.subr.bf16.mxu1 %v1054_v1  ;;  %505 = vmatpush1.bf16.xpose.msra.mxu0 %v1056_v2  ;;  %v1062_v6 = vld [vmem:[%s1727_s1 + $0x60] ss:$8 sps:$4 sm:$0xff]   ;;  %v1064_v8 = vld [vmem:[%s1727_s1 + $0x54] ss:$8 sps:$4 sm:$0xff]   ;;  %v1068_v10 = vld [vmem:[%s1727_s1 + $0x50] ss:$8 sps:$4 sm:$0xff]  }
   0x4   :  { %558 = vmatpush1.bf16.xpose.msra.mxu1 %v1057_v3  ;;  %506 = vmatprep.subr.bf16.mxu0 %v1058_v4  ;;  %v1063_v7 = vld [vmem:[%s1727_s1 + $0x160] ss:$8 sps:$4 sm:$0xff]   ;;  %v1066_v9 = vld [vmem:[%s1727_s1 + $0x154] ss:$8 sps:$4 sm:$0xff]   ;;  %v1069_v11 = vld [vmem:[%s1727_s1 + $0x150] ss:$8 sps:$4 sm:$0xff]  }
   0x5   :  { %559 = vmatprep.subr.bf16.mxu1 %v1060_v5  ;;  %v1070_v12 = vld [vmem:[%s1727_s1 + $0x44] ss:$8 sps:$4 sm:$0xff]   ;;  %v1074_v14 = vld [vmem:[%s1727_s1 + $0x40] ss:$8 sps:$4 sm:$0xff]   ;;  %v1076_v16 = vld [vmem:[%s1727_s1 + $0x34] ss:$8 sps:$4 sm:$0xff]  }
   0x6   :  { %v1072_v13 = vld [vmem:[%s1727_s1 + $0x144] ss:$8 sps:$4 sm:$0xff]   ;;  %v1075_v15 = vld [vmem:[%s1727_s1 + $0x140] ss:$8 sps:$4 sm:$0xff]   ;;  %v1078_v17 = vld [vmem:[%s1727_s1 + $0x134] ss:$8 sps:$4 sm:$0xff]  }
   0x7   :  { %v1080_v18 = vld [vmem:[%s1727_s1 + $0x30] ss:$8 sps:$4 sm:$0xff]   ;;  %v1082_v20 = vld [vmem:[%s1727_s1 + $0x24] ss:$8 sps:$4 sm:$0xff]   ;;  %v1086_v22 = vld [vmem:[%s1727_s1 + $0x20] ss:$8 sps:$4 sm:$0xff]  }
   0x8   :  { %v1081_v19 = vld [vmem:[%s1727_s1 + $0x130] ss:$8 sps:$4 sm:$0xff]   ;;  %v1084_v21 = vld [vmem:[%s1727_s1 + $0x124] ss:$8 sps:$4 sm:$0xff]   ;;  %v1087_v23 = vld [vmem:[%s1727_s1 + $0x120] ss:$8 sps:$4 sm:$0xff]  }
   0x9   :  { %v1088_v24 = vld [vmem:[%s1727_s1 + $0x14] ss:$8 sps:$4 sm:$0xff]   ;;  %v1150_v26 = vld [vmem:[%s1726_s0 + $0x4] ss:$8 sps:$4 sm:$0xff]  }
   0xa   :  { %v1090_v25 = vld [vmem:[%s1727_s1 + $0x114] ss:$8 sps:$4 sm:$0xff]  }
   0xb   :  { %507 = vmatpush1.bf16.xpose.msra.mxu0 %v1062_v6 }
   0xc   :  { %560 = vmatpush1.bf16.xpose.msra.mxu1 %v1063_v7  ;;  %508 = vmatprep.subr.bf16.mxu0 %v1064_v8 }
   0xd   :  { %561 = vmatprep.subr.bf16.mxu1 %v1066_v9 }
  0x13   :  { %509 = vmatpush1.bf16.xpose.msra.mxu0 %v1068_v10 }
  0x14   :  { %562 = vmatpush1.bf16.xpose.msra.mxu1 %v1069_v11  ;;  %510 = vmatprep.subr.bf16.mxu0 %v1070_v12 }
  0x15   :  { %563 = vmatprep.subr.bf16.mxu1 %v1072_v13 }
  0x1b   :  { %511 = vmatpush1.bf16.xpose.msra.mxu0 %v1074_v14 }
  0x1c   :  { %564 = vmatpush1.bf16.xpose.msra.mxu1 %v1075_v15  ;;  %512 = vmatprep.subr.bf16.mxu0 %v1076_v16 }
  0x1d   :  { %565 = vmatprep.subr.bf16.mxu1 %v1078_v17 }
  0x23   :  { %513 = vmatpush1.bf16.xpose.msra.mxu0 %v1080_v18 }
  0x24   :  { %566 = vmatpush1.bf16.xpose.msra.mxu1 %v1081_v19  ;;  %514 = vmatprep.subr.bf16.mxu0 %v1082_v20 }
  0x25   :  { %567 = vmatprep.subr.bf16.mxu1 %v1084_v21 }
  0x2b   :  { %515 = vmatpush1.bf16.xpose.msra.mxu0 %v1086_v22 }
  0x2c   :  { %568 = vmatpush1.bf16.xpose.msra.mxu1 %v1087_v23  ;;  %516 = vmatprep.subr.bf16.mxu0 %v1088_v24 }
  0x2d   :  { %569 = vmatprep.subr.bf16.mxu1 %v1090_v25 }
  0x2e   :  { %11 = vsyncpa [#allocation6], 0  ;;  %536 = vmatprep.mubr.bf16.mxu0 %v1150_v26  ;;  %589 = vmatprep.mubr.bf16.mxu1 %v1150_v26  ;;  %v1092_v27 = vld [vmem:[%s1727_s1 + $0x10] ss:$8 sps:$4 sm:$0xff]   ;;  %v1094_v29 = vld [vmem:[%s1727_s1 + $0x4] ss:$8 sps:$4 sm:$0xff]   ;;  %v44_v4 = vlaneseq }
  0x2f   :  { %v1093_v28 = vld [vmem:[%s1727_s1 + $0x110] ss:$8 sps:$4 sm:$0xff]   ;;  %v1096_v30 = vld [vmem:[%s1727_s1 + $0x104] ss:$8 sps:$4 sm:$0xff]   ;;  %v1098_v31 = vld [vmem:[%s1727_s1] ss:$8 sps:$4 sm:$0xff]  }
  0x30   :  { %v1099_v32 = vld [vmem:[%s1727_s1 + $0x100] ss:$8 sps:$4 sm:$0xff]   ;;  %v1100_v33 = vld [vmem:[%s1727_s1 + $0xf4] ss:$8 sps:$4 sm:$0xff]   ;;  %v1104_v35 = vld [vmem:[%s1727_s1 + $0xf0] ss:$8 sps:$4 sm:$0xff]  }
  0x31   :  { %v1102_v34 = vld [vmem:[%s1727_s1 + $0x1f4] ss:$8 sps:$4 sm:$0xff]   ;;  %v1105_v36 = vld [vmem:[%s1727_s1 + $0x1f0] ss:$8 sps:$4 sm:$0xff]   ;;  %v1106_v37 = vld [vmem:[%s1727_s1 + $0xe4] ss:$8 sps:$4 sm:$0xff]  }
  0x32   :  { %v1108_v38 = vld [vmem:[%s1727_s1 + $0x1e4] ss:$8 sps:$4 sm:$0xff]   ;;  %v1110_v39 = vld [vmem:[%s1727_s1 + $0xe0] ss:$8 sps:$4 sm:$0xff]   ;;  %v1112_v41 = vld [vmem:[%s1727_s1 + $0xd4] ss:$8 sps:$4 sm:$0xff]  }
  0x33   :  { %517 = vmatpush1.bf16.xpose.msra.mxu0 %v1092_v27  ;;  %v1111_v40 = vld [vmem:[%s1727_s1 + $0x1e0] ss:$8 sps:$4 sm:$0xff]   ;;  %v1114_v42 = vld [vmem:[%s1727_s1 + $0x1d4] ss:$8 sps:$4 sm:$0xff]   ;;  %v1116_v43 = vld [vmem:[%s1727_s1 + $0xd0] ss:$8 sps:$4 sm:$0xff]  }
  0x34   :  { %570 = vmatpush1.bf16.xpose.msra.mxu1 %v1093_v28  ;;  %518 = vmatprep.subr.bf16.mxu0 %v1094_v29  ;;  %v1117_v44 = vld [vmem:[%s1727_s1 + $0x1d0] ss:$8 sps:$4 sm:$0xff]   ;;  %v1118_v45 = vld [vmem:[%s1727_s1 + $0xc4] ss:$8 sps:$4 sm:$0xff]   ;;  %v1122_v47 = vld [vmem:[%s1727_s1 + $0xc0] ss:$8 sps:$4 sm:$0xff]  }
  0x35   :  { %571 = vmatprep.subr.bf16.mxu1 %v1096_v30  ;;  %v1120_v46 = vld [vmem:[%s1727_s1 + $0x1c4] ss:$8 sps:$4 sm:$0xff]   ;;  %v1123_v48 = vld [vmem:[%s1727_s1 + $0x1c0] ss:$8 sps:$4 sm:$0xff]   ;;  %v1124_v49 = vld [vmem:[%s1727_s1 + $0xb4] ss:$8 sps:$4 sm:$0xff]  }
  0x36   :  { %v1126_v50 = vld [vmem:[%s1727_s1 + $0x1b4] ss:$8 sps:$4 sm:$0xff]   ;;  %v1128_v51 = vld [vmem:[%s1727_s1 + $0xb0] ss:$8 sps:$4 sm:$0xff]   ;;  %v1130_v53 = vld [vmem:[%s1727_s1 + $0xa4] ss:$8 sps:$4 sm:$0xff]  }
  0x37   :  { %v1129_v52 = vld [vmem:[%s1727_s1 + $0x1b0] ss:$8 sps:$4 sm:$0xff]   ;;  %v1132_v54 = vld [vmem:[%s1727_s1 + $0x1a4] ss:$8 sps:$4 sm:$0xff]   ;;  %v1134_v55 = vld [vmem:[%s1727_s1 + $0xa0] ss:$8 sps:$4 sm:$0xff]  }
  0x38   :  { %v1135_v56 = vld [vmem:[%s1727_s1 + $0x1a0] ss:$8 sps:$4 sm:$0xff]   ;;  %v1136_v57 = vld [vmem:[%s1727_s1 + $0x94] ss:$8 sps:$4 sm:$0xff]   ;;  %v1140_v59 = vld [vmem:[%s1727_s1 + $0x90] ss:$8 sps:$4 sm:$0xff]  }
  0x39   :  { %v1138_v58 = vld [vmem:[%s1727_s1 + $0x194] ss:$8 sps:$4 sm:$0xff]   ;;  %v1141_v60 = vld [vmem:[%s1727_s1 + $0x190] ss:$8 sps:$4 sm:$0xff]   ;;  %v1142_v61 = vld [vmem:[%s1727_s1 + $0x84] ss:$8 sps:$4 sm:$0xff]  }
  0x3a   :  { %v1144_v62 = vld [vmem:[%s1727_s1 + $0x184] ss:$8 sps:$4 sm:$0xff]   ;;  %v1146_v63 = vld [vmem:[%s1727_s1 + $0x80] ss:$8 sps:$4 sm:$0xff]   ;;  %v1151_v2 = vld [vmem:[%s1726_s0 + $0x14] ss:$8 sps:$4 sm:$0xff]  }
  0x3b   :  { %519 = vmatpush1.bf16.xpose.msra.mxu0 %v1098_v31  ;;  %v1147_v0 = vld [vmem:[%s1727_s1 + $0x180] ss:$8 sps:$4 sm:$0xff]   ;;  %v1153_v3 = vld [vmem:[%s1726_s0 + $0x10] ss:$8 sps:$4 sm:$0xff]   ;;  %v45_v5 = vshrl.u32 %v44_v4, 7  ;;  %vm26_vm0 = vcmask 7168  }
  0x3c   :  { %572 = vmatpush1.bf16.xpose.msra.mxu1 %v1099_v32  ;;  %520 = vmatprep.subr.bf16.mxu0 %v1100_v33  ;;  %v1148_v1 = vld [vmem:[%s1726_s0] ss:$8 sps:$4 sm:$0xff]  }
  0x3d   :  { %573 = vmatprep.subr.bf16.mxu1 %v1102_v34  ;;  %v46_v6 = vsub.s32 0, %v45_v5  ;;  %v54_v7 = vsub.s32 2, %v45_v5  ;;  %v42_v8 = vld [vmem:[%s1728_s2] sm:$0xf]  ;;  %v50_v9 = vsub.s32 1, %v45_v5  ;;  %v58_v10 = vsub.s32 3, %v45_v5 }
  0x3f   :  { %v47_v11 = vrot.slane %v42_v8, %v46_v6  ;;  %v55_v12 = vrot.slane %v42_v8, %v54_v7  ;;  %v51_v13 = vrot.slane %v42_v8, %v50_v9  ;;  %v59_v14 = vrot.slane %v42_v8, %v58_v10 }
  0x43   :  { %521 = vmatpush2.bf16.xpose.msra.mxu0 %v1104_v35 }
  0x44   :  { %574 = vmatpush2.bf16.xpose.msra.mxu1 %v1105_v36  ;;  %522 = vmatprep.subr.bf16.mxu0 %v1106_v37 }
  0x45   :  { %575 = vmatprep.subr.bf16.mxu1 %v1108_v38 }
  0x4b   :  { %523 = vmatpush2.bf16.xpose.msra.mxu0 %v1110_v39 }
  0x4c   :  { %576 = vmatpush2.bf16.xpose.msra.mxu1 %v1111_v40  ;;  %524 = vmatprep.subr.bf16.mxu0 %v1112_v41 }
  0x4d   :  { %577 = vmatprep.subr.bf16.mxu1 %v1114_v42 }
  0x53   :  { %525 = vmatpush2.bf16.xpose.msra.mxu0 %v1116_v43 }
  0x54   :  { %578 = vmatpush2.bf16.xpose.msra.mxu1 %v1117_v44  ;;  %526 = vmatprep.subr.bf16.mxu0 %v1118_v45 }
  0x55   :  { %579 = vmatprep.subr.bf16.mxu1 %v1120_v46 }
  0x5b   :  { %527 = vmatpush2.bf16.xpose.msra.mxu0 %v1122_v47 }
  0x5c   :  { %580 = vmatpush2.bf16.xpose.msra.mxu1 %v1123_v48  ;;  %528 = vmatprep.subr.bf16.mxu0 %v1124_v49 }
  0x5d   :  { %581 = vmatprep.subr.bf16.mxu1 %v1126_v50  ;;  %v1224_v50 = vmov -inf  }
  0x5e   :  { %27 = vst.msk [vmem:[#allocation2] sm:$0xff] %vm26_vm0, %v1224_v50  ;;  %28 = vst.msk [vmem:[#allocation2 + $0x8] sm:$0xff] %vm26_vm0, %v1224_v50 }
  0x5f   :  { %29 = vst.msk [vmem:[#allocation2 + $0x10] sm:$0xff] %vm26_vm0, %v1224_v50  ;;  %30 = vst.msk [vmem:[#allocation2 + $0x18] sm:$0xff] %vm26_vm0, %v1224_v50 }
  0x63   :  { %529 = vmatpush2.bf16.xpose.msra.mxu0 %v1128_v51 }
  0x64   :  { %582 = vmatpush2.bf16.xpose.msra.mxu1 %v1129_v52  ;;  %530 = vmatprep.subr.bf16.mxu0 %v1130_v53 }
  0x65   :  { %583 = vmatprep.subr.bf16.mxu1 %v1132_v54 }
  0x66   :  { %v1567_v6 = vld [vmem:[#allocation2 + $0x10] sm:$0xff]  ;;  %v1577_v10 = vld [vmem:[#allocation2 + $0x18] sm:$0xff] }
  0x6b   :  { %531 = vmatpush2.bf16.xpose.msra.mxu0 %v1134_v55 }
  0x6c   :  { %584 = vmatpush2.bf16.xpose.msra.mxu1 %v1135_v56  ;;  %532 = vmatprep.subr.bf16.mxu0 %v1136_v57 }
  0x6d   :  { %585 = vmatprep.subr.bf16.mxu1 %v1138_v58 }
  0x73   :  { %533 = vmatpush2.bf16.xpose.msra.mxu0 %v1140_v59 }
  0x74   :  { %586 = vmatpush2.bf16.xpose.msra.mxu1 %v1141_v60  ;;  %534 = vmatprep.subr.bf16.mxu0 %v1142_v61  ;;  %v1225_v60 = vmov 0   ;;  %v1226_v61 = vmov 0.0  }
  0x75   :  { %587 = vmatprep.subr.bf16.mxu1 %v1144_v62  ;;  %1050 = vset.pattern.permute.xlu0 %v1225_v60  ;;  %31 = vst.msk [vmem:[#allocation3] sm:$0xff] %vm26_vm0, %v1226_v61  ;;  %32 = vst.msk [vmem:[#allocation3 + $0x8] sm:$0xff] %vm26_vm0, %v1226_v61  ;;  %v1552_v62 = vld [vmem:[#allocation2] sm:$0xff] }
  0x76   :  { %1051 = vset.pattern.permute.xlu1 %v1225_v60  ;;  %33 = vst.msk [vmem:[#allocation3 + $0x10] sm:$0xff] %vm26_vm0, %v1226_v61  ;;  %34 = vst.msk [vmem:[#allocation3 + $0x18] sm:$0xff] %vm26_vm0, %v1226_v61 }
  0x77   :  { %35 = vst.msk [vmem:[#allocation4] sm:$0xff] %vm26_vm0, %v1226_v61  ;;  %36 = vst.msk [vmem:[#allocation4 + $0x8] sm:$0xff] %vm26_vm0, %v1226_v61 }
  0x78   :  { %37 = vst.msk [vmem:[#allocation4 + $0x10] sm:$0xff] %vm26_vm0, %v1226_v61  ;;  %38 = vst.msk [vmem:[#allocation4 + $0x18] sm:$0xff] %vm26_vm0, %v1226_v61 }
  0x7b   :  { %535 = vmatpush2.bf16.xpose.msra.mxu0 %v1146_v63 }
  0x7c   :  { %588 = vmatpush2.bf16.xpose.msra.mxu1 %v1147_v0 }
  0x82   :  { %537 = vmatmul.mubr.bf16.vlgmr.msra.gmra.mxu0 %v1148_v1 }
  0x83   :  { %590 = vmatmul.mubr.bf16.vlgmr.msra.gmra.mxu1 %v1148_v1  ;;  %546 = vmatprep.mubr.bf16.mxu0 %v1151_v2  ;;  %v1557_v1 = vld [vmem:[#allocation2 + $0x8] sm:$0xff] }
  0x84   :  { %599 = vmatprep.mubr.bf16.mxu1 %v1151_v2 }
  0x8a   :  { %547 = vmatmul.mubr.bf16.gmra.mxu0 %v1153_v3 }
  0x8b   :  { %600 = vmatmul.mubr.bf16.gmra.mxu1 %v1153_v3 }
 0x142   :  { %v538_v15 = vpop.f32.mrf.mxu0 }
 0x143   :  { %v591_v16 = vpop.f32.mrf.mxu1  ;;  %v1468_v17 = vadd.f32 %v538_v15, %v47_v11  ;;  %v1595_v15 = vld [vmem:[%s1729_s3] sm:$0xff] }
 0x144   :  { %v1470_v18 = vadd.f32 %v591_v16, %v55_v12  ;;  %v540_v19 = vpop.f32.mrf.mxu0  ;;  %v1601_v16 = vld [vmem:[%s1729_s3 + $0x8] sm:$0xff] }
 0x145   :  { %v593_v20 = vpop.f32.mrf.mxu1  ;;  %626 = vst [vmem:[#allocation5] sm:$0xff] %v1468_v17  ;;  %v1474_v21 = vadd.f32 %v540_v19, %v51_v13  ;;  %v1607_v19 = vld [vmem:[%s1729_s3 + $0x10] sm:$0xff] }
 0x146   :  { %628 = vst [vmem:[#allocation5 + $0x10] sm:$0xff] %v1470_v18  ;;  %v1476_v22 = vadd.f32 %v593_v20, %v59_v14  ;;  %v542_v23 = vpop.f32.mrf.mxu0  ;;  %v1613_v20 = vld [vmem:[%s1729_s3 + $0x18] sm:$0xff]  ;;  %s1227_s3 = smov [#allocation5]  }
 0x147   :  { %v595_v24 = vpop.f32.mrf.mxu1  ;;  %627 = vst [vmem:[#allocation5 + $0x8] sm:$0xff] %v1474_v21  ;;  %v1480_v25 = vadd.f32 %v542_v23, %v47_v11  ;;  %v740_v27 = vmax.f32 %v1468_v17, %v1474_v21  ;;  %s957_s11 = sshll.u32 %s1227_s3, 4  ;;  %s958_s11 = int_to_ptr.vmem [resolvable:$true] %s957_s11 }
 0x148   :  { %629 = vst [vmem:[#allocation5 + $0x18] sm:$0xff] %v1476_v22  ;;  %v1482_v26 = vadd.f32 %v595_v24, %v55_v12  ;;  %v544_v28 = vpop.f32.mrf.mxu0  ;;  %s1202_s12 = scalar_lea.vmem %s958_s11, 2048  ;;  %p1207_p1 = scmp.lt.s32.totalorder %s958_s11, %s958_s11 }
 0x149   :  { %v597_v29 = vpop.f32.mrf.mxu1  ;;  %630 = vst [vmem:[#allocation5 + $0x20] sm:$0xff] %v1480_v25  ;;  %v1488_v30 = vadd.f32 %v544_v28, %v51_v13  ;;  %v741_v32 = vmax.f32 %v740_v27, %v1470_v18  ;;  %p1203_p0 = scmp.ne.s32.totalorder %s958_s11, %s1202_s12  ;;  %p1208_p2 = scmp.lt.s32.totalorder %s1202_s12, %s1202_s12 }
 0x14a   :  { %632 = vst [vmem:[#allocation5 + $0x30] sm:$0xff] %v1482_v26  ;;  %v1490_v31 = vadd.f32 %v597_v29, %v59_v14  ;;  %v548_v33 = vpop.f32.mrf.mxu0 }
 0x14b   :  { %v601_v34 = vpop.f32.mrf.mxu1  ;;  %631 = vst [vmem:[#allocation5 + $0x28] sm:$0xff] %v1488_v30  ;;  %v1495_v35 = vadd.f32 %v548_v33, %v47_v11  ;;  %v742_v37 = vmax.f32 %v741_v32, %v1476_v22  ;;  %v745_v38 = vmax.f32 %v1480_v25, %v1488_v30  ;;  %p1209_p3 = por %p1208_p2, %p1207_p1 }
 0x14c   :  { %633 = vst [vmem:[#allocation5 + $0x38] sm:$0xff] %v1490_v31  ;;  %v1497_v36 = vadd.f32 %v601_v34, %v55_v12  ;;  %v550_v39 = vpop.f32.mrf.mxu0 }
 0x14d   :  { %v603_v40 = vpop.f32.mrf.mxu1  ;;  %634 = vst [vmem:[#allocation5 + $0x40] sm:$0xff] %v1495_v35  ;;  %v1504_v41 = vadd.f32 %v550_v39, %v51_v13  ;;  %743 = vmax.xlane.f32.xlu0 %v742_v37  ;;  %v746_v43 = vmax.f32 %v745_v38, %v1482_v26  ;;  %p1210_p4 = pnand %p1209_p3, %p1203_p0 }
 0x14e   :  { %636 = vst [vmem:[#allocation5 + $0x50] sm:$0xff] %v1497_v36  ;;  %v1506_v42 = vadd.f32 %v603_v40, %v59_v14  ;;  %v552_v44 = vpop.f32.mrf.mxu0 }
 0x14f   :  { %v605_v45 = vpop.f32.mrf.mxu1  ;;  %635 = vst [vmem:[#allocation5 + $0x48] sm:$0xff] %v1504_v41  ;;  %v1511_v46 = vadd.f32 %v552_v44, %v47_v11  ;;  %v747_v48 = vmax.f32 %v746_v43, %v1490_v31  ;;  %v750_v49 = vmax.f32 %v1495_v35, %v1504_v41 }
 0x150   :  { %637 = vst [vmem:[#allocation5 + $0x58] sm:$0xff] %v1506_v42  ;;  %v1513_v47 = vadd.f32 %v605_v45, %v55_v12  ;;  %v554_v51 = vpop.f32.mrf.mxu0 }
 0x151   :  { %v607_v52 = vpop.f32.mrf.mxu1  ;;  %638 = vst [vmem:[#allocation5 + $0x60] sm:$0xff] %v1511_v46  ;;  %v1524_v53 = vadd.f32 %v554_v51, %v51_v13  ;;  %748 = vmax.xlane.f32.xlu0 %v747_v48  ;;  %v751_v55 = vmax.f32 %v750_v49, %v1497_v36 }
 0x152   :  { %640 = vst [vmem:[#allocation5 + $0x70] sm:$0xff] %v1513_v47  ;;  %v1526_v54 = vadd.f32 %v607_v52, %v59_v14 }
 0x153   :  { %639 = vst [vmem:[#allocation5 + $0x68] sm:$0xff] %v1524_v53  ;;  %v752_v56 = vmax.f32 %v751_v55, %v1506_v42  ;;  %v755_v57 = vmax.f32 %v1511_v46, %v1524_v53 }
 0x154   :  { %641 = vst [vmem:[#allocation5 + $0x78] sm:$0xff] %v1526_v54 }
 0x155   :  { %753 = vmax.xlane.f32.xlu1 %v752_v56  ;;  %v756_v58 = vmax.f32 %v755_v57, %v1513_v47 }
 0x157   :  { %v757_v59 = vmax.f32 %v756_v58, %v1526_v54 }
 0x159   :  { %758 = vmax.xlane.f32.xlu1 %v757_v59 }
 0x1d6   :  { %v744_v63 = vpop.xlane.xlu0 %743 }
 0x1d7   :  { %v1555_v0 = vmax.f32 %v1552_v62, %v744_v63  ;;  %v1629_v63 = vand.u32 127, %v44_v4 }
 0x1d9   :  { %v772_v2 = vsub.f32 %v1552_v62, %v1555_v0  ;;  %897 = vst.msk [vmem:[#allocation2] sm:$0xff] %vm26_vm0, %v1555_v0  ;;  %790 = vperm.xlu0 %1050, %v1555_v0  }
 0x1da   :  { %v749_v3 = vpop.xlane.xlu0 %748 }
 0x1db   :  { %v1565_v5 = vmax.f32 %v1557_v1, %v749_v3 }
 0x1dd   :  { %v773_v7 = vsub.f32 %v1557_v1, %v1565_v5  ;;  %898 = vst.msk [vmem:[#allocation2 + $0x8] sm:$0xff] %vm26_vm0, %v1565_v5  ;;  %795 = vperm.xlu1 %1051, %v1565_v5  }
 0x1de   :  { %v754_v8 = vpop.xlane.xlu1 %753 }
 0x1df   :  { %v1575_v9 = vmax.f32 %v1567_v6, %v754_v8 }
 0x1e1   :  { %v774_v11 = vsub.f32 %v1567_v6, %v1575_v9  ;;  %899 = vst.msk [vmem:[#allocation2 + $0x10] sm:$0xff] %vm26_vm0, %v1575_v9  ;;  %800 = vperm.xlu1 %1051, %v1575_v9  }
 0x1e2   :  { %v759_v12 = vpop.xlane.xlu1 %758 }
 0x1e3   :  { %v1585_v13 = vmax.f32 %v1577_v10, %v759_v12 }
 0x1e5   :  { %v775_v14 = vsub.f32 %v1577_v10, %v1585_v13  ;;  %900 = vst.msk [vmem:[#allocation2 + $0x18] sm:$0xff] %vm26_vm0, %v1585_v13  ;;  %805 = vperm.xlu1 %1051, %v1585_v13  }
 0x1e9   :  { %677 = vperm.xlu1 %1051, %v1595_v15  }
 0x1ed   :  { %680 = vperm.xlu1 %1051, %v1601_v16  }
 0x1f1   :  { %683 = vperm.xlu1 %1051, %v1607_v19  }
 0x1f5   :  { %686 = vperm.xlu1 %1051, %v1613_v20  }
 0x254   :  { %v791_v23 = vpop.permute.xlu0 %790 }
 0x255   :  { %v808_v24 = vsub.f32 %v1468_v17, %v791_v23  ;;  %v809_v27 = vsub.f32 %v1474_v21, %v791_v23  ;;  %v810_v28 = vsub.f32 %v1470_v18, %v791_v23  ;;  %v811_v29 = vsub.f32 %v1476_v22, %v791_v23 }
 0x257   :  { %v824_v32 = vmul.f32 1.442695, %v808_v24  ;;  %v826_v33 = vmul.f32 1.442695, %v809_v27  ;;  %v828_v34 = vmul.f32 1.442695, %v810_v28 }
 0x258   :  { %v830_v37 = vmul.f32 1.442695, %v811_v29  ;;  %v796_v38 = vpop.permute.xlu1 %795 }
 0x259   :  { %1154 = vpow2.f32 %v824_v32  ;;  %v812_v39 = vsub.f32 %v1480_v25, %v796_v38  ;;  %v813_v40 = vsub.f32 %v1488_v30, %v796_v38  ;;  %v814_v43 = vsub.f32 %v1482_v26, %v796_v38 }
 0x25a   :  { %1156 = vpow2.f32 %v826_v33  ;;  %v815_v44 = vsub.f32 %v1490_v31, %v796_v38  ;;  %v667_v33 = vadd.s32 128, %v1629_v63 }
 0x25b   :  { %1158 = vpow2.f32 %v828_v34  ;;  %v832_v45 = vmul.f32 1.442695, %v812_v39  ;;  %v834_v48 = vmul.f32 1.442695, %v813_v40  ;;  %v836_v49 = vmul.f32 1.442695, %v814_v43 }
 0x25c   :  { %1160 = vpow2.f32 %v830_v37  ;;  %v838_v50 = vmul.f32 1.442695, %v815_v44  ;;  %v801_v51 = vpop.permute.xlu1 %800 }
 0x25d   :  { %1162 = vpow2.f32 %v832_v45  ;;  %v816_v52 = vsub.f32 %v1495_v35, %v801_v51  ;;  %v817_v55 = vsub.f32 %v1504_v41, %v801_v51  ;;  %v818_v56 = vsub.f32 %v1497_v36, %v801_v51 }
 0x25e   :  { %1164 = vpow2.f32 %v834_v48  ;;  %v819_v57 = vsub.f32 %v1506_v42, %v801_v51 }
 0x25f   :  { %1166 = vpow2.f32 %v836_v49  ;;  %v840_v58 = vmul.f32 1.442695, %v816_v52  ;;  %v842_v59 = vmul.f32 1.442695, %v817_v55  ;;  %v844_v60 = vmul.f32 1.442695, %v818_v56 }
 0x260   :  { %1168 = vpow2.f32 %v838_v50  ;;  %v846_v3 = vmul.f32 1.442695, %v819_v57  ;;  %v806_v8 = vpop.permute.xlu1 %805  ;;  %v1644_v50 = vadd.s32 256, %v1629_v63 }
 0x261   :  { %1170 = vpow2.f32 %v840_v58  ;;  %v820_v12 = vsub.f32 %v1511_v46, %v806_v8  ;;  %v821_v23 = vsub.f32 %v1524_v53, %v806_v8  ;;  %v822_v24 = vsub.f32 %v1513_v47, %v806_v8 }
 0x262   :  { %1172 = vpow2.f32 %v842_v59  ;;  %v823_v27 = vsub.f32 %v1526_v54, %v806_v8 }
 0x263   :  { %1174 = vpow2.f32 %v844_v60  ;;  %v848_v28 = vmul.f32 1.442695, %v820_v12  ;;  %v850_v29 = vmul.f32 1.442695, %v821_v23  ;;  %v852_v32 = vmul.f32 1.442695, %v822_v24 }
 0x264   :  { %1176 = vpow2.f32 %v846_v3  ;;  %v1635_v4 = vpop.permute.xlu1 %677  ;;  %v854_v37 = vmul.f32 1.442695, %v823_v27  ;;  %v669_v12 = vadd.s32 384, %v1629_v63 }
 0x265   :  { %1178 = vpow2.f32 %v848_v28  ;;  %vm688_vm1 = vcmp.eq.s32.totalorder %v1629_v63, %v1635_v4  ;;  %vm689_vm2 = vcmp.eq.s32.totalorder %v667_v33, %v1635_v4  ;;  %vm690_vm7 = vcmp.eq.s32.totalorder %v1644_v50, %v1635_v4 }
 0x266   :  { %v1155_v34 = vpop.eup %1154  ;;  %1180 = vpow2.f32 %v850_v29  ;;  %v704_v57 = vsel %vm688_vm1, %v1468_v17, 0.0  ;;  %v705_v58 = vsel %vm689_vm2, %v1474_v21, 0.0  ;;  %vm691_vm10 = vcmp.eq.s32.totalorder %v669_v12, %v1635_v4 }
 0x267   :  { %v1157_v38 = vpop.eup %1156  ;;  %1182 = vpow2.f32 %v852_v32  ;;  %v720_v17 = vadd.f32 %v705_v58, %v704_v57 }
 0x268   :  { %v1159_v39 = vpop.eup %1158  ;;  %v1638_v40 = vpop.permute.xlu1 %680  ;;  %v856_v43 = vadd.f32 %v1157_v38, %v1155_v34  ;;  %1184 = vpow2.f32 %v854_v37 }
 0x269   :  { %v1161_v44 = vpop.eup %1160  ;;  %vm692_vm3 = vcmp.eq.s32.totalorder %v1629_v63, %v1638_v40  ;;  %vm693_vm4 = vcmp.eq.s32.totalorder %v667_v33, %v1638_v40  ;;  %vm694_vm11 = vcmp.eq.s32.totalorder %v1644_v50, %v1638_v40  ;;  %vm695_vm13 = vcmp.eq.s32.totalorder %v669_v12, %v1638_v40 }
 0x26a   :  { %v1163_v45 = vpop.eup %1162  ;;  %v857_v48 = vadd.f32 %v1159_v39, %v856_v43  ;;  %v708_v28 = vsel %vm692_vm3, %v1480_v25, 0.0  ;;  %v709_v29 = vsel %vm693_vm4, %v1488_v30, 0.0  ;;  %v706_v43 = vsel %vm690_vm7, %v1470_v18, 0.0 }
 0x26b   :  { %v1165_v49 = vpop.eup %1164  ;;  %v721_v25 = vadd.f32 %v720_v17, %v706_v43  ;;  %v725_v30 = vadd.f32 %v709_v29, %v708_v28  ;;  %v707_v18 = vsel %vm691_vm10, %v1476_v22, 0.0  ;;  %v710_v4 = vsel %vm694_vm11, %v1482_v26, 0.0 }
 0x26c   :  { %v1167_v51 = vpop.eup %1166  ;;  %v684_v52 = vpop.permute.xlu1 %683  ;;  %v858_v55 = vadd.f32 %v1161_v44, %v857_v48  ;;  %v861_v56 = vadd.f32 %v1165_v49, %v1163_v45 }
 0x26d   :  { %v1169_v59 = vpop.eup %1168  ;;  %vm696_vm5 = vcmp.eq.s32.totalorder %v1629_v63, %v684_v52  ;;  %vm697_vm6 = vcmp.eq.s32.totalorder %v667_v33, %v684_v52  ;;  %vm698_vm12 = vcmp.eq.s32.totalorder %v1644_v50, %v684_v52  ;;  %vm699_vm14 = vcmp.eq.s32.totalorder %v669_v12, %v684_v52 }
 0x26e   :  { %v1171_v60 = vpop.eup %1170  ;;  %859 = vadd.xlane.f32.xlu1 %v858_v55  ;;  %v862_v3 = vadd.f32 %v1167_v51, %v861_v56  ;;  %v712_v34 = vsel %vm696_vm5, %v1495_v35, 0.0  ;;  %v713_v37 = vsel %vm697_vm6, %v1504_v41, 0.0  ;;  %v722_v55 = vadd.f32 %v721_v25, %v707_v18 }
 0x26f   :  { %v1173_v8 = vpop.eup %1172  ;;  %v714_v56 = vsel %vm698_vm12, %v1497_v36, 0.0  ;;  %v726_v57 = vadd.f32 %v725_v30, %v710_v4  ;;  %v715_v22 = vsel %vm699_vm14, %v1506_v42, 0.0 }
 0x270   :  { %v1175_v21 = vpop.eup %1174  ;;  %v687_v23 = vpop.permute.xlu1 %686  ;;  %v863_v24 = vadd.f32 %v1169_v59, %v862_v3  ;;  %v866_v27 = vadd.f32 %v1173_v8, %v1171_v60 }
 0x271   :  { %v1177_v32 = vpop.eup %1176  ;;  %vm700_vm8 = vcmp.eq.s32.totalorder %v1629_v63, %v687_v23  ;;  %vm701_vm9 = vcmp.eq.s32.totalorder %v667_v33, %v687_v23  ;;  %v730_v63 = vadd.f32 %v713_v37, %v712_v34  ;;  %vm702_vm15 = vcmp.eq.s32.totalorder %v1644_v50, %v687_v23 }
 0x272   :  { %v1179_v38 = vpop.eup %1178  ;;  %864 = vadd.xlane.f32.xlu0 %v863_v24  ;;  %v867_v39 = vadd.f32 %v1175_v21, %v866_v27  ;;  %v716_v45 = vsel %vm700_vm8, %v1511_v46, 0.0  ;;  %v717_v48 = vsel %vm701_vm9, %v1524_v53, 0.0  ;;  %v711_v53 = vsel %vm695_vm13, %v1490_v31, 0.0 }
 0x273   :  { %v1181_v44 = vpop.eup %1180  ;;  %v731_v59 = vadd.f32 %v730_v63, %v714_v56  ;;  %v735_v46 = vadd.f32 %v717_v48, %v716_v45  ;;  %v718_v40 = vsel %vm702_vm15, %v1513_v47, 0.0  ;;  %v727_v60 = vadd.f32 %v726_v57, %v711_v53 }
 0x274   :  { %v868_v35 = vadd.f32 %v1177_v32, %v867_v39  ;;  %v871_v41 = vadd.f32 %v1181_v44, %v1179_v38  ;;  %v1183_v33 = vpop.eup %1182  ;;  %vm703_vm1 = vcmp.eq.s32.totalorder %v669_v12, %v687_v23 }
 0x275   :  { %v1185_v51 = vpop.eup %1184  ;;  %v732_v26 = vadd.f32 %v731_v59, %v715_v22  ;;  %v736_v52 = vadd.f32 %v735_v46, %v718_v40  ;;  %v719_v36 = vsel %vm703_vm1, %v1526_v54, 0.0 }
 0x276   :  { %869 = vadd.xlane.f32.xlu0 %v868_v35  ;;  %v872_v49 = vadd.f32 %v1183_v33, %v871_v41 }
 0x277   :  { %v737_v3 = vadd.f32 %v736_v52, %v719_v36 }
 0x278   :  { %v873_v58 = vadd.f32 %v1185_v51, %v872_v49 }
 0x27a   :  { %723 = vadd.xlane.f32.xlu0 %v722_v55  ;;  %874 = vadd.xlane.f32.xlu1 %v873_v58 }
 0x27e   :  { %733 = vadd.xlane.f32.xlu0 %v732_v26  ;;  %728 = vadd.xlane.f32.xlu1 %v727_v60 }
 0x282   :  { %738 = vadd.xlane.f32.xlu1 %v737_v3 }
 0x283   :  { %1213 = shalt.err (!%p1210_p4)
}
 0x284   :  { %s1228_s13 = smov 512   ;;  %s1229_s14 = smov 32   ;;  %v776_v31 = vmul.f32 1.442695, %v772_v2  ;;  %v778_v42 = vmul.f32 1.442695, %v773_v7 }
 0x285   :  { %963 = dma.vmem_to_hbm [thread:$0]  %s958_s11, 2048, %s1730_s4, [#allocation6], %s1228_s13, %s1228_s13, %s1229_s14   ;;  %v780_v47 = vmul.f32 1.442695, %v774_v11  ;;  %v782_v54 = vmul.f32 1.442695, %v775_v14 }
 0x286   :  { %1186 = vpow2.f32 %v776_v31  ;;  %v768_v8 = vld [vmem:[#allocation3] sm:$0xff]  ;;  %v769_v12 = vld [vmem:[#allocation3 + $0x8] sm:$0xff]  ;;  %v770_v6 = vld [vmem:[#allocation3 + $0x10] sm:$0xff]  ;;  %vm924_vm2 = vcmp.ne.s32.totalorder %v1595_v15, 4294967196  ;;  %vm925_vm3 = vcmp.ne.s32.totalorder %v1601_v16, 4294967196  ;;  %vm926_vm4 = vcmp.ne.s32.totalorder %v1607_v19, 4294967196 }
 0x287   :  { %1188 = vpow2.f32 %v778_v42  ;;  %v771_v14 = vld [vmem:[#allocation3 + $0x18] sm:$0xff]  ;;  %v885_v24 = vld [vmem:[#allocation4] sm:$0xff]  ;;  %v886_v38 = vld [vmem:[#allocation4 + $0x8] sm:$0xff]  ;;  %v1040_v55 = vsel %vm924_vm2, 1.0, %v1226_v61  ;;  %v1041_v40 = vsel %vm925_vm3, 1.0, %v1226_v61  ;;  %v1042_v31 = vsel %vm926_vm4, 1.0, %v1226_v61 }
 0x288   :  { %1190 = vpow2.f32 %v780_v47  ;;  %v887_v39 = vld [vmem:[#allocation4 + $0x10] sm:$0xff]  ;;  %v888_v41 = vld [vmem:[#allocation4 + $0x18] sm:$0xff]  ;;  %v904_v49 = vld [vmem:[#allocation2] sm:$0xff]  ;;  %vm927_vm5 = vcmp.ne.s32.totalorder %v1613_v20, 4294967196 }
 0x289   :  { %1192 = vpow2.f32 %v782_v54  ;;  %v905_v59 = vld [vmem:[#allocation2 + $0x8] sm:$0xff]  ;;  %v906_v52 = vld [vmem:[#allocation2 + $0x10] sm:$0xff]  ;;  %v907_v54 = vld [vmem:[#allocation2 + $0x18] sm:$0xff] }
 0x293   :  { %v1187_v50 = vpop.eup %1186 }
 0x294   :  { %v784_v62 = vmul.f32 %v1187_v50, %v768_v8  ;;  %v1189_v0 = vpop.eup %1188 }
 0x295   :  { %v785_v1 = vmul.f32 %v1189_v0, %v769_v12  ;;  %v1191_v5 = vpop.eup %1190 }
 0x296   :  { %v786_v11 = vmul.f32 %v1191_v5, %v770_v6  ;;  %v1193_v10 = vpop.eup %1192 }
 0x297   :  { %v787_v27 = vmul.f32 %v1193_v10, %v771_v14 }
 0x2f7   :  { %v860_v2 = vpop.xlane.xlu1 %859 }
 0x2f8   :  { %v876_v17 = vadd.f32 %v860_v2, %v784_v62  ;;  %v1043_v62 = vsel %vm927_vm5, 1.0, %v1226_v61 }
 0x2fa   :  { %881 = vst.msk [vmem:[#allocation3] sm:$0xff] %vm26_vm0, %v876_v17 }
 0x2fb   :  { %v865_v7 = vpop.xlane.xlu0 %864 }
 0x2fc   :  { %v877_v9 = vadd.f32 %v865_v7, %v785_v1 }
 0x2fe   :  { %882 = vst.msk [vmem:[#allocation3 + $0x8] sm:$0xff] %vm26_vm0, %v877_v9 }
 0x2ff   :  { %v870_v13 = vpop.xlane.xlu0 %869 }
 0x300   :  { %v878_v21 = vadd.f32 %v870_v13, %v786_v11 }
 0x301   :  { %v908_v23 = vld [vmem:[#allocation3] sm:$0xff] }
 0x302   :  { %1194 = vlog2.f32 %v908_v23  ;;  %883 = vst.msk [vmem:[#allocation3 + $0x10] sm:$0xff] %vm26_vm0, %v878_v21 }
 0x303   :  { %v875_v28 = vpop.xlane.xlu1 %874  ;;  %v724_v29 = vpop.xlane.xlu0 %723 }
 0x304   :  { %v879_v32 = vadd.f32 %v875_v28, %v787_v27  ;;  %v889_v34 = vadd.f32 %v885_v24, %v724_v29 }
 0x305   :  { %v909_v37 = vld [vmem:[#allocation3 + $0x8] sm:$0xff] }
 0x306   :  { %1196 = vlog2.f32 %v909_v37  ;;  %884 = vst.msk [vmem:[#allocation3 + $0x18] sm:$0xff] %vm26_vm0, %v879_v32  ;;  %893 = vst.msk [vmem:[#allocation4] sm:$0xff] %vm26_vm0, %v889_v34 }
 0x307   :  { %v729_v43 = vpop.xlane.xlu1 %728  ;;  %v734_v44 = vpop.xlane.xlu0 %733 }
 0x308   :  { %v890_v25 = vadd.f32 %v886_v38, %v729_v43  ;;  %v891_v30 = vadd.f32 %v887_v39, %v734_v44 }
 0x309   :  { %v910_v35 = vld [vmem:[#allocation3 + $0x10] sm:$0xff] }
 0x30a   :  { %1198 = vlog2.f32 %v910_v35  ;;  %894 = vst.msk [vmem:[#allocation4 + $0x8] sm:$0xff] %vm26_vm0, %v890_v25  ;;  %895 = vst.msk [vmem:[#allocation4 + $0x10] sm:$0xff] %vm26_vm0, %v891_v30 }
 0x30b   :  { %v739_v63 = vpop.xlane.xlu1 %738 }
 0x30c   :  { %v892_v33 = vadd.f32 %v888_v41, %v739_v63 }
 0x30d   :  { %v911_v45 = vld [vmem:[#allocation3 + $0x18] sm:$0xff]  ;;  %v936_v56 = vld [vmem:[#allocation4] sm:$0xff] }
 0x30e   :  { %1200 = vlog2.f32 %v911_v45  ;;  %896 = vst.msk [vmem:[#allocation4 + $0x18] sm:$0xff] %vm26_vm0, %v892_v33 }
 0x30f   :  { %v1195_v48 = vpop.eup %1194 }
 0x310   :  { %v913_v18 = vmul.f32 0.6931472, %v1195_v48 }
 0x311   :  { %v937_v26 = vld [vmem:[#allocation4 + $0x8] sm:$0xff]  ;;  %v938_v42 = vld [vmem:[#allocation4 + $0x10] sm:$0xff] }
 0x312   :  { %v920_v4 = vadd.f32 %v913_v18, %v904_v49 }
 0x313   :  { %v1197_v51 = vpop.eup %1196 }
 0x314   :  { %v940_v57 = vsub.f32 %v920_v4, %v936_v56  ;;  %v915_v58 = vmul.f32 0.6931472, %v1197_v51 }
 0x315   :  { %v939_v0 = vld [vmem:[#allocation4 + $0x18] sm:$0xff] }
 0x316   :  { %v944_v46 = vmul.f32 %v1040_v55, %v940_v57  ;;  %v921_v22 = vadd.f32 %v915_v58, %v905_v59 }
 0x317   :  { %v1199_v53 = vpop.eup %1198 }
 0x318   :  { %948 = vst.msk [vmem:[%s1731_s5] sm:$0xff] %vm26_vm0, %v944_v46  ;;  %v941_v15 = vsub.f32 %v921_v22, %v937_v26  ;;  %v917_v60 = vmul.f32 0.6931472, %v1199_v53 }
 0x31a   :  { %v945_v16 = vmul.f32 %v1041_v40, %v941_v15  ;;  %v922_v36 = vadd.f32 %v917_v60, %v906_v52 }
 0x31b   :  { %v1201_v3 = vpop.eup %1200 }
 0x31c   :  { %949 = vst.msk [vmem:[%s1731_s5 + $0x8] sm:$0xff] %vm26_vm0, %v945_v16  ;;  %v942_v19 = vsub.f32 %v922_v36, %v938_v42  ;;  %v919_v47 = vmul.f32 0.6931472, %v1201_v3 }
 0x31e   :  { %v946_v50 = vmul.f32 %v1042_v31, %v942_v19  ;;  %v923_v8 = vadd.f32 %v919_v47, %v907_v54 }
 0x320   :  { %950 = vst.msk [vmem:[%s1731_s5 + $0x10] sm:$0xff] %vm26_vm0, %v946_v50  ;;  %v943_v2 = vsub.f32 %v923_v8, %v939_v0 }
 0x322   :  { %v947_v20 = vmul.f32 %v1043_v62, %v943_v2 }
 0x324   :  { %951 = vst.msk [vmem:[%s1731_s5 + $0x18] sm:$0xff] %vm26_vm0, %v947_v20 }
 0x325   :  { %1222 = dma.done.wait [#allocation6], 2048  }
 0x326   :  { %1223 = vsyncadd [#allocation6], 4294965248 }
 0x327   :  { %971 = vsyncpa [#allocation6], 1 }

</bundles_post_ra>
